<compile_context>
chip_gen: v7x
topology: tpu7x:2x2x1
jax: 0.10.0
libtpu: 0.0.40
codegen_flags: <defaults>
</compile_context>

<pallas_src>
import math

import jax
import jax.numpy as jnp
from jax.experimental import pallas as pl
from jax.experimental.pallas import tpu as pltpu


def _choose_tile_rows(S, B, D, itemsize, *, vmem_block_budget=8 << 20, min_steps=4):
    """Rows per tile for blocks laid out as (ts, B*D) (+ a (ts, D) pe block)."""
    W = B * D
    # VMEM per tile row: double-buffered x-in + out (4 copies) + double-buffered pe.
    bytes_per_row = (4 * W + 2 * D) * itemsize
    ts_cap = max(8, min(2048, vmem_block_budget // bytes_per_row))
    ts_cap -= ts_cap % 8

    if S % 8 != 0:
        # Odd-sized sequence: one full block is legal (block dim == array dim);
        # if it doesn't fit, use a multiple-of-8 tile and let the cdiv grid
        # clip the ragged tail.
        return S if S <= ts_cap else ts_cap

    if S < 8 * min_steps:
        return S  # tiny: a single block; splitting only adds per-step overhead

    # Aim for >= min_steps grid steps (pipelining + v7x dual-core) within VMEM cap.
    target = min(ts_cap, max(8, -(-S // min_steps)))
    target -= target % 8
    target = max(target, 8)

    # Prefer the largest tile <= target that divides S exactly (no ragged tail).
    t = target
    while t >= 8:
        if S % t == 0:
            return t
        t -= 8
    return target  # ragged tail handled by the cdiv grid


def _make_pos_enc_kernel(p, training, *, batch, tile_rows, width):
    """Kernel factory: p / training / layout constants are baked at trace time."""
    apply_dropout = bool(training) and float(p) > 0.0
    scale = 1.0 / (1.0 - float(p)) if apply_dropout else 1.0
    # Integer dropout threshold: keep iff hash_bits >= thr  =>  P[keep] = 1 - p.
    thr_int = min(int(round(float(p) * 2.0 ** 32)), 2 ** 32 - 1)

    def kernel(seed_ref, x_ref, pe_ref, o_ref):
        # x_ref / o_ref: (ts, B*D) -- sequence rows on sublanes (dense for any B).
        # pe_ref: (ts, D).
        x = x_ref[...]
        pe = pe_ref[...].astype(x.dtype)
        # Broadcast pe over the batch along the lane axis.
        y = x + jnp.tile(pe, (1, batch))

        if apply_dropout:
            # Stateless counter hash (lowbias32 finalizer): mask depends only on
            # (seed, global element index) -> tiling / grid-order invariant.
            r = jax.lax.broadcasted_iota(jnp.int32, y.shape, 0)
            c = jax.lax.broadcasted_iota(jnp.int32, y.shape, 1)
            idx = (r + pl.program_id(0) * tile_rows) * width + c
            h = idx.astype(jnp.uint32) * jnp.uint32(0x9E3779B9)
            h = h + seed_ref[0].astype(jnp.uint32)
            h = h ^ (h >> 16)
            h = h * jnp.uint32(0x7FEB352D)
            h = h ^ (h >> 15)
            h = h * jnp.uint32(0x846CA68B)
            h = h ^ (h >> 16)
            keep = h >= jnp.uint32(thr_int)
            y = jnp.where(keep, y * jnp.asarray(scale, y.dtype),
                          jnp.asarray(0.0, y.dtype))

        o_ref[...] = y.astype(o_ref.dtype)

    return kernel


def positional_encoding_pallas(x, pe, *, p=0.1, training=False, seed=0, ts=None,
                               donate_x=False):
    """x: (S, B, D); pe: (S, D). Returns dropout(x + pe[:, None, :])."""
    S, B, D = x.shape
    assert pe.shape == (S, D), (pe.shape, (S, D))
    W = B * D

    # Free, contiguous reshape: sequence rows on sublanes, batch*feature on lanes.
    x2 = x.reshape(S, W)
    pe = pe.astype(x.dtype)  # half-width DMA when x is bf16

    if ts is None:
        ts = _choose_tile_rows(S, B, D, jnp.dtype(x.dtype).itemsize)
    grid = (pl.cdiv(S, ts),)

    seed_arr = jnp.asarray([seed], dtype=jnp.int32)
    kernel = _make_pos_enc_kernel(p, training, batch=B, tile_rows=ts, width=W)

    out2 = pl.pallas_call(
        kernel,
        out_shape=jax.ShapeDtypeStruct((S, W), x.dtype),
        grid_spec=pltpu.PrefetchScalarGridSpec(
            num_scalar_prefetch=1,                              # seed lives in SMEM
            grid=grid,
            in_specs=[
                pl.BlockSpec((ts, W), lambda i, seed_ref: (i, 0)),  # x rows
                pl.BlockSpec((ts, D), lambda i, seed_ref: (i, 0)),  # pe rows
            ],
            out_specs=pl.BlockSpec((ts, W), lambda i, seed_ref: (i, 0)),
        ),
        compiler_params=pltpu.CompilerParams(
            dimension_semantics=("parallel",),
            vmem_limit_bytes=32 * 1024 * 1024,
        ),
        input_output_aliases=({1: 0} if donate_x else {}),
    )(seed_arr, x2, pe)

    return out2.reshape(S, B, D)


class PositionalEncodingPallas:
    """Pallas port of PositionalEncoding(d_model, dropout, max_len)."""

    def __init__(self, d_model, dropout=0.1, max_len=5000):
        self.d_model = int(d_model)
        self.p = float(dropout)
        self.max_len = int(max_len)
        # Same sinusoidal buffer as the torch module; stored as (max_len, d_model),
        # the torch buffer's singleton batch dim is handled by in-kernel broadcast.
        position = jnp.arange(max_len, dtype=jnp.float32)[:, None]
        div_term = jnp.exp(
            jnp.arange(0, d_model, 2, dtype=jnp.float32)
            * (-math.log(10000.0) / d_model)
        )
        angles = position * div_term[None, :]
        pe = jnp.zeros((max_len, d_model), jnp.float32)
        pe = pe.at[:, 0::2].set(jnp.sin(angles))
        pe = pe.at[:, 1::2].set(jnp.cos(angles))
        self.pe = pe

    def __call__(self, x, *, training=False, rng_seed=0, donate_x=False):
        S, B, D = x.shape
        assert D == self.d_model and S <= self.max_len
        pe_s = self.pe[:S]  # cheap static slice
        return positional_encoding_pallas(
            x, pe_s, p=self.p, training=training, seed=rng_seed, donate_x=donate_x
        )


if __name__ == "__main__":
    key = jax.random.PRNGKey(0)
    seq, bs, d_model = 8, 2, 128  # lane-dense: B*D = 256 on the lane axis

    mod = PositionalEncodingPallas(d_model, dropout=0.1, max_len=5000)
    x = jax.random.normal(key, (seq, bs, d_model), dtype=jnp.float32)

    # --- eval mode (dropout == identity): exact check vs pure-JAX reference ---
    out = jax.block_until_ready(mod(x, training=False))
    ref = x + mod.pe[:seq][:, None, :]
    assert out.shape == (seq, bs, d_model), out.shape
    assert jnp.allclose(out, ref, atol=1e-6, rtol=1e-6), float(
        jnp.max(jnp.abs(out - ref))
    )

    # --- training mode smoke test: fused inverted dropout (p = 0.1) ---
    # TODO(synk): the PRNG stream differs from torch's nn.Dropout, so we check
    # dropout semantics (drop rate and 1/(1-p) rescale), not bit-exactness.
    out_tr = jax.block_until_ready(mod(x, training=True, rng_seed=1234))
    assert out_tr.shape == (seq, bs, d_model)
    drop_frac = float(jnp.mean((out_tr == 0.0).astype(jnp.float32)))
    assert 0.01 < drop_frac < 0.30, drop_frac
    kept = out_tr != 0.0
    assert jnp.allclose(
        jnp.where(kept, out_tr, 0.0),
        jnp.where(kept, ref / (1.0 - mod.p), 0.0),
        atol=1e-5,
        rtol=1e-5,
    )

    print("KERNEL_OK")
</pallas_src>

<mosaic_0001>
module attributes {stable_mosaic.version = 11 : i64} {
  func.func @kernel(%arg0: i32, %arg1: memref<1xi32, #tpu.memory_space<smem>>, %arg2: memref<8x256xf32, #tpu.memory_space<vmem>>, %arg3: memref<8x128xf32, #tpu.memory_space<vmem>>, %arg4: memref<8x256xf32, #tpu.memory_space<vmem>>) attributes {dimension_semantics = [#tpu.dimension_semantics<parallel>], iteration_bounds = array<i64: 1>, scalar_prefetch = 1 : i64, scratch_operands = 0 : i64, tpu.core_type = #tpu.core_type<tc>, window_params = [{transform_indices = @transform_0, window_bounds = array<i64: 8, 256>}, {transform_indices = @transform_1, window_bounds = array<i64: 8, 128>}, {transform_indices = @transform_2, window_bounds = array<i64: 8, 256>}]} {
    %c0 = arith.constant 0 : index
    %c0_0 = arith.constant 0 : index
    %0 = vector.load %arg2[%c0, %c0_0] : memref<8x256xf32, #tpu.memory_space<vmem>>, vector<8x256xf32>
    %c0_1 = arith.constant 0 : index
    %c0_2 = arith.constant 0 : index
    %1 = vector.load %arg3[%c0_1, %c0_2] : memref<8x128xf32, #tpu.memory_space<vmem>>, vector<8x128xf32>
    %2 = tpu.concatenate %1, %1 in 1 : vector<8x128xf32>, vector<8x128xf32> -> vector<8x256xf32>
    %3 = arith.addf %0, %2 : vector<8x256xf32>
    %c0_3 = arith.constant 0 : index
    %c0_4 = arith.constant 0 : index
    %4 = vector.load %arg4[%c0_3, %c0_4] : memref<8x256xf32, #tpu.memory_space<vmem>>, vector<8x256xf32>
    tpu.vector_store %arg4[%c0_3, %c0_4], %3 {strides = array<i32>} : memref<8x256xf32, #tpu.memory_space<vmem>>, vector<8x256xf32>,
    return
  }
  func.func @transform_0(%arg0: i32, %arg1: memref<1xi32, #tpu.memory_space<smem>>) -> (i32, i32) {
    %c0_i32 = arith.constant 0 : i32
    %c0_i32_0 = arith.constant 0 : i32
    return %arg0, %c0_i32 : i32, i32
  }
  func.func @transform_1(%arg0: i32, %arg1: memref<1xi32, #tpu.memory_space<smem>>) -> (i32, i32) {
    %c0_i32 = arith.constant 0 : i32
    %c0_i32_0 = arith.constant 0 : i32
    return %arg0, %c0_i32 : i32, i32
  }
  func.func @transform_2(%arg0: i32, %arg1: memref<1xi32, #tpu.memory_space<smem>>) -> (i32, i32) {
    %c0_i32 = arith.constant 0 : i32
    %c0_i32_0 = arith.constant 0 : i32
    return %arg0, %c0_i32 : i32, i32
  }
}

</mosaic_0001>

<bundles_post_ra>
// kernel: tpu_custom_call.1
= control target key start
LH: loop header
LB: loop body
LE: loop exit
PB: predicated region body
PF: predicated region fallthrough
CT: control target
= control target key end

     0   :  { %9 = vsyncpa [#allocation5], 0  ;;  %s195_s0 = inlined_call_operand.<no memory space> [shape: s32[1], index: 0, kind: input, shape index: {}]   ;;  %s196_s1 = inlined_call_operand.hbm [shape: f32[8,256], index: 1, kind: input, shape index: {}]   ;;  %s197_s2 = inlined_call_operand.hbm [shape: f32[8,128], index: 2, kind: input, shape index: {}]   ;;  %s198_s3 = inlined_call_operand.hbm [shape: f32[8,256], index: 3, kind: output, shape index: {}]  }
   0x1   :  { %10 = vsyncpa [#allocation8], 0 }
   0x2   :  { %11 = vsyncpa [#allocation6], 0  ;;  %s136_s12 = smov [#allocation4]   ;;  %s137_s14 = smov [#allocation7]  }
   0x3   :  { %s18_s13 = sshll.u32 %s136_s12, 4  ;;  %s28_s15 = sshll.u32 %s137_s14, 4  ;;  %s19_s13 = int_to_ptr.vmem [resolvable:$true] %s18_s13  ;;  %s29_s15 = int_to_ptr.vmem [resolvable:$true] %s28_s15 }
   0x4   :  { %s64_s17 = scalar_lea.hbm %s196_s1, 256 }
   0x5   :  { %p65_p0 = scmp.ne.s32.totalorder %s196_s1, %s64_s17  ;;  %p68_p1 = scmp.lt.u32.totalorder %s64_s17, %s196_s1 }
   0x7   :  { %p70_p2 = pnand %p68_p1, %p65_p0 }
   0x9   :  { %73 = shalt.err (!%p70_p2)
}
   0xa   :  { %s74_s22 = scalar_lea.vmem %s19_s13, 256  ;;  %p79_p4 = scmp.lt.s32.totalorder %s19_s13, %s19_s13 }
   0xb   :  { %p75_p3 = scmp.ne.s32.totalorder %s19_s13, %s74_s22  ;;  %p80_p5 = scmp.lt.s32.totalorder %s74_s22, %s74_s22 }
   0xd   :  { %p81_p6 = por %p80_p5, %p79_p4 }
   0xf   :  { %p82_p7 = pnand %p81_p6, %p75_p3 }
  0x11   :  { %85 = shalt.err (!%p82_p7)
}
  0x12   :  { %21 = dma.hbm_to_vmem [thread:$0]  %s196_s1, 256, %s19_s13, [#allocation5]  }
  0x13   :  { %s86_s27 = scalar_lea.hbm %s197_s2, 128 }
  0x14   :  { %p87_p8 = scmp.ne.s32.totalorder %s197_s2, %s86_s27  ;;  %p90_p9 = scmp.lt.u32.totalorder %s86_s27, %s197_s2 }
  0x16   :  { %p92_p10 = pnand %p90_p9, %p87_p8 }
  0x18   :  { %95 = shalt.err (!%p92_p10)
}
  0x19   :  { %s96_s5 = scalar_lea.vmem %s29_s15, 128  ;;  %p101_p12 = scmp.lt.s32.totalorder %s29_s15, %s29_s15 }
  0x1a   :  { %p97_p11 = scmp.ne.s32.totalorder %s29_s15, %s96_s5  ;;  %p102_p13 = scmp.lt.s32.totalorder %s96_s5, %s96_s5 }
  0x1c   :  { %p103_p0 = por %p102_p13, %p101_p12 }
  0x1e   :  { %p104_p1 = pnand %p103_p0, %p97_p11 }
  0x20   :  { %107 = shalt.err (!%p104_p1)
}
  0x21   :  { %31 = dma.hbm_to_vmem [thread:$0]  %s197_s2, 128, %s29_s15, [#allocation8]  }
  0x22   :  { %130 = dma.done.wait [#allocation5], 256  }
  0x23   :  { %131 = vsyncadd [#allocation5], 4294967040 }
  0x24   :  { %132 = dma.done.wait [#allocation8], 128  }
  0x25   :  { %133 = vsyncadd [#allocation8], 4294967168  ;;  %s138_s7 = smov [#allocation9]   ;;  %v38_v0 = vld [vmem:[#allocation4] sm:$0xff]  ;;  %v40_v1 = vld [vmem:[#allocation7] sm:$0xff] }
  0x26   :  { %s51_s8 = sshll.u32 %s138_s7, 4  ;;  %v39_v2 = vld [vmem:[#allocation4 + $0x8] sm:$0xff]  ;;  %v41_v3 = vadd.f32 %v40_v1, %v38_v0  ;;  %s52_s8 = int_to_ptr.vmem [resolvable:$true] %s51_s8 }
  0x27   :  { %v42_v4 = vadd.f32 %v40_v1, %v39_v2  ;;  %s108_s9 = scalar_lea.vmem %s52_s8, 256  ;;  %p113_p3 = scmp.lt.s32.totalorder %s52_s8, %s52_s8 }
  0x28   :  { %43 = vst [vmem:[#allocation9] sm:$0xff] %v41_v3  ;;  %p109_p2 = scmp.ne.s32.totalorder %s52_s8, %s108_s9  ;;  %p114_p4 = scmp.lt.s32.totalorder %s108_s9, %s108_s9 }
  0x29   :  { %44 = vst [vmem:[#allocation9 + $0x8] sm:$0xff] %v42_v4 }
  0x2a   :  { %p115_p5 = por %p114_p4, %p113_p3 }
  0x2c   :  { %p116_p6 = pnand %p115_p5, %p109_p2 }
  0x2e   :  { %119 = shalt.err (!%p116_p6)
}
  0x2f   :  { %s120_s11 = scalar_lea.hbm %s198_s3, 256 }
  0x30   :  { %p121_p7 = scmp.ne.s32.totalorder %s198_s3, %s120_s11  ;;  %p124_p8 = scmp.lt.u32.totalorder %s120_s11, %s198_s3 }
  0x32   :  { %p126_p9 = pnand %p124_p8, %p121_p7 }
  0x34   :  { %129 = shalt.err (!%p126_p9)
}
  0x35   :  { %54 = dma.vmem_to_hbm [thread:$0]  %s52_s8, 256, %s198_s3, [#allocation6]  }
  0x36   :  { %134 = dma.done.wait [#allocation6], 256  }
  0x37   :  { %135 = vsyncadd [#allocation6], 4294967040 }
  0x38   :  { %58 = vsyncpa [#allocation5], 1 }
  0x39   :  { %59 = vsyncpa [#allocation8], 1 }
  0x3a   :  { %60 = vsyncpa [#allocation6], 1 }

</bundles_post_ra>
